<compile_context>
chip_gen: v7x
topology: tpu7x:2x2x1
jax: 0.10.0
libtpu: 0.0.40
codegen_flags: <defaults>
</compile_context>

<pallas_src>
import jax
import jax.numpy as jnp
from jax.experimental import pallas as pl
from jax.experimental.pallas import tpu as pltpu


def _make_actor_kernel(max_action: float):
    def actor_kernel(x_ref, w1_ref, b1_ref, w2_ref, b2_ref, o_ref):
        # fc1: (tm,128)bf16 @ (128,128)bf16 -> f32 acc, bias + ReLU in f32
        h = jnp.dot(x_ref[...], w1_ref[...], preferred_element_type=jnp.float32)
        h = jnp.maximum(h + b1_ref[...], 0.0)
        # action_out: cast activations to bf16 for the MXU, accumulate in f32
        a = jnp.dot(h.astype(jnp.bfloat16), w2_ref[...],
                    preferred_element_type=jnp.float32)
        a = a + b2_ref[...]
        # tanh / scale stay f32; lane-dense (tm, 128) store
        o_ref[...] = (max_action * jnp.tanh(a)).astype(o_ref.dtype)

    return actor_kernel


def end_actor_forward(x, w1, b1, w2, b2, max_action, *, tm=512):
    """x: (B,128) f32. w1: (128,128), b1: (128,), w2: (128,A), b2: (A,).

    Weights are stored (in, out) so the kernel computes plain `x @ W + b`.
    Returns (B, A) f32 actions.
    """
    B, H = x.shape
    A = w2.shape[1]
    A_PAD = 128  # lane-dense output width

    # --- choose batch tile: multiple of 8 sublanes, no larger than needed ---
    b_round8 = -(-B // 8) * 8
    tm_eff = min(tm, b_round8)
    tm_eff = -(-tm_eff // 8) * 8
    Bp = -(-B // tm_eff) * tm_eff  # padded batch, multiple of tm_eff

    # --- operand prep: bf16 matmul inputs, zero-padded lane-dense W2/b2 ------
    xb = jnp.zeros((Bp, H), jnp.bfloat16).at[:B].set(x.astype(jnp.bfloat16))
    w1b = w1.astype(jnp.bfloat16)
    w2p = jnp.zeros((H, A_PAD), jnp.float32).at[:, :A].set(w2)
    w2b = w2p.astype(jnp.bfloat16)
    b1_2d = b1.reshape(1, H).astype(jnp.float32)
    b2_2d = jnp.zeros((1, A_PAD), jnp.float32).at[0, :A].set(b2)

    kernel = _make_actor_kernel(float(max_action))

    out_padded = pl.pallas_call(
        kernel,
        out_shape=jax.ShapeDtypeStruct((Bp, A_PAD), jnp.float32),
        grid=(Bp // tm_eff,),
        in_specs=[
            pl.BlockSpec((tm_eff, H), lambda i: (i, 0)),   # x tile
            pl.BlockSpec((H, H), lambda i: (0, 0)),        # W1 (resident)
            pl.BlockSpec((1, H), lambda i: (0, 0)),        # b1 (resident)
            pl.BlockSpec((H, A_PAD), lambda i: (0, 0)),    # W2 padded (resident)
            pl.BlockSpec((1, A_PAD), lambda i: (0, 0)),    # b2 padded (resident)
        ],
        out_specs=pl.BlockSpec((tm_eff, A_PAD), lambda i: (i, 0)),
        compiler_params=pltpu.CompilerParams(
            dimension_semantics=("parallel",)),
    )(xb, w1b, b1_2d, w2b, b2_2d)

    return out_padded[:B, :A]


def _init_linear(key, fan_in, fan_out):
    """Deterministic init mimicking PyTorch nn.Linear defaults (U(-k, k))."""
    kw, kb = jax.random.split(key)
    bound = 1.0 / jnp.sqrt(fan_in)
    # Stored as (in, out) so the kernel does x @ W.
    w = jax.random.uniform(kw, (fan_in, fan_out), jnp.float32, -bound, bound)
    b = jax.random.uniform(kb, (fan_out,), jnp.float32, -bound, bound)
    return w, b


if __name__ == "__main__":
    env_params = {"action": 4, "action_max": 1.0}

    key = jax.random.PRNGKey(0)
    kx, k1, k2 = jax.random.split(key, 3)

    B, H, A = 64, 128, env_params["action"]
    x = jax.random.normal(kx, (B, H), jnp.float32)

    w1, b1 = _init_linear(k1, H, H)          # fc1: 128 -> 128
    w2, b2 = _init_linear(k2, H, A)          # action_out: 128 -> A

    out = end_actor_forward(x, w1, b1, w2, b2, env_params["action_max"])
    out = jax.block_until_ready(out)
    assert out.shape == (B, A)

    # --- exact-path reference (same bf16 quantization as the kernel) --------
    xq = x.astype(jnp.bfloat16).astype(jnp.float32)
    w1q = w1.astype(jnp.bfloat16).astype(jnp.float32)
    w2q = w2.astype(jnp.bfloat16).astype(jnp.float32)
    h = jnp.maximum(xq @ w1q + b1, 0.0)
    hq = h.astype(jnp.bfloat16).astype(jnp.float32)
    ref_bf16 = env_params["action_max"] * jnp.tanh(hq @ w2q + b2)
    assert jnp.allclose(out, ref_bf16, atol=1e-4, rtol=1e-4)

    # --- semantic reference in full f32 (loose tolerance for bf16 matmuls) --
    ref_f32 = env_params["action_max"] * jnp.tanh(
        jnp.maximum(x @ w1 + b1, 0.0) @ w2 + b2
    )
    assert jnp.allclose(out, ref_f32, atol=3e-2)

    print("KERNEL_OK")
</pallas_src>

<mosaic_0001>
module attributes {stable_mosaic.version = 11 : i64} {
  func.func @actor_kernel(%arg0: i32, %arg1: memref<64x128xbf16, #tpu.memory_space<vmem>>, %arg2: memref<128x128xbf16, #tpu.memory_space<vmem>>, %arg3: memref<1x128xf32, #tpu.memory_space<vmem>>, %arg4: memref<128x128xbf16, #tpu.memory_space<vmem>>, %arg5: memref<1x128xf32, #tpu.memory_space<vmem>>, %arg6: memref<64x128xf32, #tpu.memory_space<vmem>>) attributes {dimension_semantics = [#tpu.dimension_semantics<parallel>], iteration_bounds = array<i64: 1>, scalar_prefetch = 0 : i64, scratch_operands = 0 : i64, tpu.core_type = #tpu.core_type<tc>, window_params = [{transform_indices = @transform_0, window_bounds = array<i64: 64, 128>}, {pipeline_mode = #tpu.pipeline_mode<synchronous>, transform_indices = @transform_1, window_bounds = array<i64: 128, 128>}, {pipeline_mode = #tpu.pipeline_mode<synchronous>, transform_indices = @transform_2, window_bounds = array<i64: 1, 128>}, {pipeline_mode = #tpu.pipeline_mode<synchronous>, transform_indices = @transform_3, window_bounds = array<i64: 128, 128>}, {pipeline_mode = #tpu.pipeline_mode<synchronous>, transform_indices = @transform_4, window_bounds = array<i64: 1, 128>}, {transform_indices = @transform_5, window_bounds = array<i64: 64, 128>}]} {
    %c0 = arith.constant 0 : index
    %c0_0 = arith.constant 0 : index
    %0 = vector.load %arg1[%c0, %c0_0] : memref<64x128xbf16, #tpu.memory_space<vmem>>, vector<64x128xbf16>
    %c0_1 = arith.constant 0 : index
    %c0_2 = arith.constant 0 : index
    %1 = vector.load %arg2[%c0_1, %c0_2] : memref<128x128xbf16, #tpu.memory_space<vmem>>, vector<128x128xbf16>
    %cst = arith.constant dense<0.000000e+00> : vector<64x128xf32>
    %2 = tpu.matmul %0, %1, %cst {dimension_numbers = #tpu.dot_dimension_numbers<[1], [0], [0], [1], [0, 0, 1, 1], [], []>} : vector<64x128xbf16>, vector<128x128xbf16>, vector<64x128xf32> -> vector<64x128xf32>
    %c0_3 = arith.constant 0 : index
    %c0_4 = arith.constant 0 : index
    %3 = vector.load %arg3[%c0_3, %c0_4] : memref<1x128xf32, #tpu.memory_space<vmem>>, vector<1x128xf32>
    %4 = vector.broadcast %3 : vector<1x128xf32> to vector<64x128xf32>
    %5 = arith.addf %2, %4 : vector<64x128xf32>
    %cst_5 = arith.constant 0.000000e+00 : f32
    %6 = vector.broadcast %cst_5 : f32 to vector<64x128xf32>
    %7 = arith.maximumf %5, %6 : vector<64x128xf32>
    %8 = arith.truncf %7 : vector<64x128xf32> to vector<64x128xbf16>
    %c0_6 = arith.constant 0 : index
    %c0_7 = arith.constant 0 : index
    %9 = vector.load %arg4[%c0_6, %c0_7] : memref<128x128xbf16, #tpu.memory_space<vmem>>, vector<128x128xbf16>
    %cst_8 = arith.constant dense<0.000000e+00> : vector<64x128xf32>
    %10 = tpu.matmul %8, %9, %cst_8 {dimension_numbers = #tpu.dot_dimension_numbers<[1], [0], [0], [1], [0, 0, 1, 1], [], []>} : vector<64x128xbf16>, vector<128x128xbf16>, vector<64x128xf32> -> vector<64x128xf32>
    %c0_9 = arith.constant 0 : index
    %c0_10 = arith.constant 0 : index
    %11 = vector.load %arg5[%c0_9, %c0_10] : memref<1x128xf32, #tpu.memory_space<vmem>>, vector<1x128xf32>
    %12 = vector.broadcast %11 : vector<1x128xf32> to vector<64x128xf32>
    %13 = arith.addf %10, %12 : vector<64x128xf32>
    %14 = math.tanh %13 : vector<64x128xf32>
    %cst_11 = arith.constant 1.000000e+00 : f32
    %15 = vector.broadcast %cst_11 : f32 to vector<64x128xf32>
    %16 = arith.mulf %15, %14 : vector<64x128xf32>
    %c0_12 = arith.constant 0 : index
    %c0_13 = arith.constant 0 : index
    %17 = vector.load %arg6[%c0_12, %c0_13] : memref<64x128xf32, #tpu.memory_space<vmem>>, vector<64x128xf32>
    tpu.vector_store %arg6[%c0_12, %c0_13], %16 {strides = array<i32>} : memref<64x128xf32, #tpu.memory_space<vmem>>, vector<64x128xf32>,
    return
  }
  func.func @transform_0(%arg0: i32) -> (i32, i32) {
    %c0_i32 = arith.constant 0 : i32
    %c0_i32_0 = arith.constant 0 : i32
    return %arg0, %c0_i32 : i32, i32
  }
  func.func @transform_1(%arg0: i32) -> (i32, i32) {
    %c0_i32 = arith.constant 0 : i32
    %c0_i32_0 = arith.constant 0 : i32
    %c0_i32_1 = arith.constant 0 : i32
    return %c0_i32, %c0_i32_0 : i32, i32
  }
  func.func @transform_2(%arg0: i32) -> (i32, i32) {
    %c0_i32 = arith.constant 0 : i32
    %c0_i32_0 = arith.constant 0 : i32
    %c0_i32_1 = arith.constant 0 : i32
    return %c0_i32, %c0_i32_0 : i32, i32
  }
  func.func @transform_3(%arg0: i32) -> (i32, i32) {
    %c0_i32 = arith.constant 0 : i32
    %c0_i32_0 = arith.constant 0 : i32
    %c0_i32_1 = arith.constant 0 : i32
    return %c0_i32, %c0_i32_0 : i32, i32
  }
  func.func @transform_4(%arg0: i32) -> (i32, i32) {
    %c0_i32 = arith.constant 0 : i32
    %c0_i32_0 = arith.constant 0 : i32
    %c0_i32_1 = arith.constant 0 : i32
    return %c0_i32, %c0_i32_0 : i32, i32
  }
  func.func @transform_5(%arg0: i32) -> (i32, i32) {
    %c0_i32 = arith.constant 0 : i32
    %c0_i32_0 = arith.constant 0 : i32
    return %arg0, %c0_i32 : i32, i32
  }
}

</mosaic_0001>

<bundles_post_ra>
// kernel: tpu_custom_call.1
= control target key start
LH: loop header
LB: loop body
LE: loop exit
PB: predicated region body
PF: predicated region fallthrough
CT: control target
= control target key end

     0   :  { %10 = vsyncpa [#allocation3], 0  ;;  %s753_s0 = inlined_call_operand.hbm [shape: bf16[64,128], index: 0, kind: input, shape index: {}]   ;;  %s754_s1 = inlined_call_operand.hbm [shape: bf16[128,128], index: 1, kind: input, shape index: {}]   ;;  %s755_s2 = inlined_call_operand.vmem [shape: f32[1,128], index: 2, kind: input, shape index: {}]   ;;  %s756_s3 = inlined_call_operand.hbm [shape: bf16[128,128], index: 3, kind: input, shape index: {}]   ;;  %s757_s4 = inlined_call_operand.vmem [shape: f32[1,128], index: 4, kind: input, shape index: {}]   ;;  %s758_s5 = inlined_call_operand.hbm [shape: f32[64,128], index: 5, kind: output, shape index: {}]  }
   0x1   :  { %11 = vsyncpa [#allocation6], 0 }
   0x2   :  { %12 = vsyncpa [#allocation4], 0  ;;  %s645_s18 = smov [#allocation5]   ;;  %s646_s20 = smov [#allocation2]  }
   0x3   :  { %s30_s19 = sshll.u32 %s645_s18, 4  ;;  %s18_s21 = sshll.u32 %s646_s20, 4  ;;  %s31_s19 = int_to_ptr.vmem [resolvable:$true] %s30_s19  ;;  %s683_s21 = int_to_ptr.vmem [resolvable:$true] %s18_s21 }
   0x4   :  { %s551_s24 = scalar_lea.hbm %s754_s1, 1024 }
   0x5   :  { %p552_p0 = scmp.ne.s32.totalorder %s754_s1, %s551_s24  ;;  %p555_p1 = scmp.lt.u32.totalorder %s551_s24, %s754_s1 }
   0x7   :  { %p557_p2 = pnand %p555_p1, %p552_p0 }
   0x9   :  { %560 = shalt.err (!%p557_p2)
}
   0xa   :  { %s561_s29 = scalar_lea.vmem %s31_s19, 1024  ;;  %p566_p4 = scmp.lt.s32.totalorder %s31_s19, %s31_s19 }
   0xb   :  { %p562_p3 = scmp.ne.s32.totalorder %s31_s19, %s561_s29  ;;  %p567_p5 = scmp.lt.s32.totalorder %s561_s29, %s561_s29 }
   0xd   :  { %p568_p6 = por %p567_p5, %p566_p4 }
   0xf   :  { %p569_p7 = pnand %p568_p6, %p562_p3 }
  0x11   :  { %572 = shalt.err (!%p569_p7)
}
  0x12   :  { %s647_s30 = smov 64   ;;  %s648_s6 = smov 4  }
  0x13   :  { %36 = dma.hbm_to_vmem [thread:$0]  %s754_s1, 1024, %s31_s19, [#allocation6], %s647_s30, %s647_s30, %s648_s6  }
  0x14   :  { %s573_s11 = scalar_lea.hbm %s753_s0, 512 }
  0x15   :  { %p574_p8 = scmp.ne.s32.totalorder %s753_s0, %s573_s11  ;;  %p577_p9 = scmp.lt.u32.totalorder %s573_s11, %s753_s0 }
  0x17   :  { %p579_p10 = pnand %p577_p9, %p574_p8 }
  0x19   :  { %582 = shalt.err (!%p579_p10)
}
  0x1a   :  { %s583_s16 = scalar_lea.vmem %s683_s21, 512  ;;  %p588_p12 = scmp.lt.s32.totalorder %s683_s21, %s683_s21 }
  0x1b   :  { %p584_p11 = scmp.ne.s32.totalorder %s683_s21, %s583_s16  ;;  %p589_p13 = scmp.lt.s32.totalorder %s583_s16, %s583_s16 }
  0x1d   :  { %p590_p0 = por %p589_p13, %p588_p12 }
  0x1f   :  { %p591_p1 = pnand %p590_p0, %p584_p11 }
  0x21   :  { %594 = shalt.err (!%p591_p1)
}
  0x22   :  { %24 = dma.hbm_to_vmem [thread:$0]  %s753_s0, 512, %s683_s21, [#allocation3], %s647_s30, %s647_s30, %s648_s6  }
  0x23   :  { %s649_s18 = smov [#allocation7]   ;;  %s595_s23 = scalar_lea.hbm %s756_s3, 1024 }
  0x24   :  { %s44_s19 = sshll.u32 %s649_s18, 4  ;;  %p596_p2 = scmp.ne.s32.totalorder %s756_s3, %s595_s23  ;;  %s45_s19 = int_to_ptr.vmem [resolvable:$true] %s44_s19 }
  0x25   :  { %p599_p3 = scmp.lt.u32.totalorder %s595_s23, %s756_s3 }
  0x27   :  { %p601_p4 = pnand %p599_p3, %p596_p2 }
  0x29   :  { %604 = shalt.err (!%p601_p4)
}
  0x2a   :  { %s605_s28 = scalar_lea.vmem %s45_s19, 1024  ;;  %p610_p6 = scmp.lt.s32.totalorder %s45_s19, %s45_s19 }
  0x2b   :  { %p606_p5 = scmp.ne.s32.totalorder %s45_s19, %s605_s28  ;;  %p611_p7 = scmp.lt.s32.totalorder %s605_s28, %s605_s28 }
  0x2d   :  { %p612_p8 = por %p611_p7, %p610_p6 }
  0x2f   :  { %p613_p9 = pnand %p612_p8, %p606_p5 }
  0x31   :  { %616 = shalt.err (!%p613_p9)
}
  0x32   :  { %50 = dma.hbm_to_vmem [thread:$0]  %s756_s3, 1024, %s45_s19, [#allocation6], %s647_s30, %s647_s30, %s648_s6  }
  0x33   :  { %639 = dma.done.wait [#allocation3], 512  }
  0x34   :  { %640 = vsyncadd [#allocation3], 4294966784 }
  0x35   :  { %641 = dma.done.wait [#allocation6], 2048  }
  0x36   :  { %642 = vsyncadd [#allocation6], 4294965248  ;;  %v515_v0 = vld [vmem:[#allocation5] sm:$0xff]   ;;  %v516_v1 = vld [vmem:[#allocation5 + $0x8] sm:$0xff]  }
  0x37   :  { %459 = vmatprep.subr.bf16.mxu0 %v515_v0  ;;  %v517_v2 = vld [vmem:[#allocation5 + $0x10] sm:$0xff]   ;;  %v518_v3 = vld [vmem:[#allocation5 + $0x18] sm:$0xff]   ;;  %v523_v4 = vld [vmem:[#allocation2] sm:$0xff]  }
  0x38   :  { %460 = vmatpush3.bf16.msra.mxu0 %v515_v0  ;;  %475 = vmatprep.mubr.bf16.mxu0 %v523_v4  ;;  %v519_v5 = vld [vmem:[#allocation5 + $0x20] sm:$0xff]   ;;  %v528_v7 = vld [vmem:[#allocation7 + $0x8] sm:$0xff]   ;;  %v529_v9 = vld [vmem:[#allocation7 + $0x10] sm:$0xff]  }
  0x39   :  { %461 = vmatprep.subr.bf16.mxu0 %v516_v1  ;;  %v527_v6 = vld [vmem:[#allocation7] sm:$0xff]   ;;  %v520_v8 = vld [vmem:[#allocation5 + $0x28] sm:$0xff]   ;;  %v521_v10 = vld [vmem:[#allocation5 + $0x30] sm:$0xff]  }
  0x3a   :  { %483 = vmatprep.subr.bf16.mxu1 %v527_v6  ;;  %v530_v11 = vld [vmem:[#allocation7 + $0x18] sm:$0xff]   ;;  %v531_v13 = vld [vmem:[#allocation7 + $0x20] sm:$0xff]   ;;  %v532_v14 = vld [vmem:[#allocation7 + $0x28] sm:$0xff]  }
  0x3b   :  { %484 = vmatpush3.bf16.msra.mxu1 %v527_v6  ;;  %v522_v12 = vld [vmem:[#allocation5 + $0x38] sm:$0xff]   ;;  %v524_v15 = vld [vmem:[#allocation2 + $0x8] sm:$0xff]   ;;  %v525_v16 = vld [vmem:[#allocation2 + $0x10] sm:$0xff]  }
  0x3c   :  { %462 = vmatpush3.bf16.msra.mxu0 %v516_v1  ;;  %485 = vmatprep.subr.bf16.mxu1 %v528_v7  ;;  %v526_v17 = vld [vmem:[#allocation2 + $0x18] sm:$0xff]   ;;  %v533_v18 = vld [vmem:[#allocation7 + $0x30] sm:$0xff]   ;;  %v413_v20 = vld [vmem:[%s755_s2] ss:$0 sm:$0xff] }
  0x3d   :  { %463 = vmatprep.subr.bf16.mxu0 %v517_v2  ;;  %v534_v19 = vld [vmem:[#allocation7 + $0x38] sm:$0xff]   ;;  %v426_v49 = vld [vmem:[%s757_s4] ss:$0 sm:$0xff]  ;;  %s650_s4 = smov [#allocation8]  }
  0x3e   :  { %s400_s6 = sshll.u32 %s650_s4, 4  ;;  %s401_s6 = int_to_ptr.vmem [resolvable:$true] %s400_s6 }
  0x3f   :  { %486 = vmatpush3.bf16.msra.mxu1 %v528_v7  ;;  %s617_s7 = scalar_lea.vmem %s401_s6, 1024  ;;  %p622_p11 = scmp.lt.s32.totalorder %s401_s6, %s401_s6 }
  0x40   :  { %464 = vmatpush3.bf16.msra.mxu0 %v517_v2  ;;  %487 = vmatprep.subr.bf16.mxu1 %v529_v9  ;;  %p618_p10 = scmp.ne.s32.totalorder %s401_s6, %s617_s7  ;;  %p623_p12 = scmp.lt.s32.totalorder %s617_s7, %s617_s7 }
  0x41   :  { %465 = vmatprep.subr.bf16.mxu0 %v518_v3 }
  0x42   :  { %p624_p13 = por %p623_p12, %p622_p11 }
  0x43   :  { %488 = vmatpush3.bf16.msra.mxu1 %v529_v9 }
  0x44   :  { %466 = vmatpush3.bf16.msra.mxu0 %v518_v3  ;;  %489 = vmatprep.subr.bf16.mxu1 %v530_v11  ;;  %p625_p0 = pnand %p624_p13, %p618_p10 }
  0x45   :  { %467 = vmatprep.subr.bf16.mxu0 %v519_v5 }
  0x47   :  { %490 = vmatpush3.bf16.msra.mxu1 %v530_v11 }
  0x48   :  { %468 = vmatpush3.bf16.msra.mxu0 %v519_v5  ;;  %491 = vmatprep.subr.bf16.mxu1 %v531_v13 }
  0x49   :  { %469 = vmatprep.subr.bf16.mxu0 %v520_v8 }
  0x4b   :  { %492 = vmatpush3.bf16.msra.mxu1 %v531_v13 }
  0x4c   :  { %470 = vmatpush3.bf16.msra.mxu0 %v520_v8  ;;  %493 = vmatprep.subr.bf16.mxu1 %v532_v14 }
  0x4d   :  { %471 = vmatprep.subr.bf16.mxu0 %v521_v10 }
  0x4f   :  { %494 = vmatpush3.bf16.msra.mxu1 %v532_v14 }
  0x50   :  { %472 = vmatpush3.bf16.msra.mxu0 %v521_v10  ;;  %495 = vmatprep.subr.bf16.mxu1 %v533_v18 }
  0x51   :  { %473 = vmatprep.subr.bf16.mxu0 %v522_v12 }
  0x53   :  { %496 = vmatpush3.bf16.msra.mxu1 %v533_v18 }
  0x54   :  { %474 = vmatpush3.bf16.msra.mxu0 %v522_v12  ;;  %497 = vmatprep.subr.bf16.mxu1 %v534_v19 }
  0x57   :  { %476 = vmatmul.mubr.bf16.vlgmr.msra.gmra.mrb[0].mxu0 %v524_v15  ;;  %498 = vmatpush3.bf16.msra.mxu1 %v534_v19 }
  0x58   :  { %479 = vmatprep.mubr.bf16.mxu0 %v525_v16 }
  0x5f   :  { %480 = vmatmul.mubr.bf16.gmra.mrb[4].mxu0 %v526_v17 }
 0x12a   :  { %v477_v21 = vpop.f32.mrb[0].mxu0 }
 0x12b   :  { %v209_v22 = vadd.f32 %v477_v21, %v413_v20  ;;  %v200_v23 = vpop.f32.mrb[1].mxu0 }
 0x12c   :  { %v201_v24 = vadd.f32 %v413_v20, %v200_v23  ;;  %v478_v25 = vpop.f32.mrb[2].mxu0 }
 0x12d   :  { %v212_v26 = vadd.f32 %v478_v25, %v413_v20  ;;  %v203_v27 = vpop.f32.mrb[3].mxu0  ;;  %v233_v29 = vmax.f32 %v209_v22, 0.0 }
 0x12e   :  { %v204_v28 = vadd.f32 %v413_v20, %v203_v27  ;;  %v231_v31 = vmax.f32 %v201_v24, 0.0 }
 0x12f   :  { %v234_v30 = vmax.f32 %v212_v26, 0.0 }
 0x130   :  { %v232_v32 = vmax.f32 %v204_v28, 0.0 }
 0x131   :  { %v240_v33 = vpack.c.bf16 %v234_v30, %v233_v29 }
 0x132   :  { %v481_v34 = vpop.f32.mrb[4].mxu0  ;;  %v239_v35 = vpack.c.bf16 %v232_v32, %v231_v31 }
 0x133   :  { %v225_v36 = vadd.f32 %v481_v34, %v413_v20  ;;  %v216_v37 = vpop.f32.mrb[5].mxu0 }
 0x134   :  { %v217_v38 = vadd.f32 %v413_v20, %v216_v37  ;;  %v482_v39 = vpop.f32.mrb[6].mxu0  ;;  %499 = vmatprep.mubr.bf16.mxu1 %v239_v35 }
 0x135   :  { %v228_v40 = vadd.f32 %v482_v39, %v413_v20  ;;  %v219_v41 = vpop.f32.mrb[7].mxu0  ;;  %500 = vmatmul.mubr.bf16.vlgmr.msra.gmra.mrb[0].mxu1 %v240_v33  ;;  %v237_v43 = vmax.f32 %v225_v36, 0.0 }
 0x136   :  { %v220_v42 = vadd.f32 %v413_v20, %v219_v41  ;;  %v235_v45 = vmax.f32 %v217_v38, 0.0 }
 0x137   :  { %v238_v44 = vmax.f32 %v228_v40, 0.0 }
 0x138   :  { %v236_v46 = vmax.f32 %v220_v42, 0.0 }
 0x139   :  { %v242_v47 = vpack.c.bf16 %v238_v44, %v237_v43 }
 0x13a   :  { %v241_v48 = vpack.c.bf16 %v236_v46, %v235_v45 }
 0x13c   :  { %503 = vmatprep.mubr.bf16.mxu1 %v241_v48 }
 0x13d   :  { %504 = vmatmul.mubr.bf16.gmra.mrb[4].mxu1 %v242_v47 }
 0x208   :  { %v501_v50 = vpop.f32.mrb[0].mxu1 }
 0x209   :  { %v357_v51 = vadd.f32 %v501_v50, %v426_v49  ;;  %v348_v52 = vpop.f32.mrb[1].mxu1 }
 0x20a   :  { %v349_v53 = vadd.f32 %v426_v49, %v348_v52  ;;  %v502_v54 = vpop.f32.mrb[2].mxu1 }
 0x20b   :  { %535 = vtanh.f32 %v357_v51  ;;  %v360_v55 = vadd.f32 %v502_v54, %v426_v49  ;;  %v351_v56 = vpop.f32.mrb[3].mxu1 }
 0x20c   :  { %537 = vtanh.f32 %v349_v53  ;;  %v352_v57 = vadd.f32 %v426_v49, %v351_v56 }
 0x20d   :  { %539 = vtanh.f32 %v360_v55 }
 0x20e   :  { %541 = vtanh.f32 %v352_v57 }
 0x210   :  { %v505_v58 = vpop.f32.mrb[4].mxu1 }
 0x211   :  { %v373_v59 = vadd.f32 %v505_v58, %v426_v49  ;;  %v364_v60 = vpop.f32.mrb[5].mxu1 }
 0x212   :  { %v365_v61 = vadd.f32 %v426_v49, %v364_v60  ;;  %v506_v62 = vpop.f32.mrb[6].mxu1 }
 0x213   :  { %543 = vtanh.f32 %v373_v59  ;;  %v376_v63 = vadd.f32 %v506_v62, %v426_v49  ;;  %v367_v0 = vpop.f32.mrb[7].mxu1 }
 0x214   :  { %545 = vtanh.f32 %v365_v61  ;;  %v368_v1 = vadd.f32 %v426_v49, %v367_v0 }
 0x215   :  { %v536_v2 = vpop.eup %535  ;;  %547 = vtanh.f32 %v376_v63 }
 0x216   :  { %v538_v3 = vpop.eup %537  ;;  %389 = vst [vmem:[#allocation8 + $0x10] sm:$0xff] %v536_v2  ;;  %549 = vtanh.f32 %v368_v1 }
 0x217   :  { %v540_v4 = vpop.eup %539  ;;  %387 = vst [vmem:[#allocation8] sm:$0xff] %v538_v3 }
 0x218   :  { %v542_v5 = vpop.eup %541  ;;  %390 = vst [vmem:[#allocation8 + $0x18] sm:$0xff] %v540_v4 }
 0x219   :  { %388 = vst [vmem:[#allocation8 + $0x8] sm:$0xff] %v542_v5 }
 0x21d   :  { %v544_v6 = vpop.eup %543 }
 0x21e   :  { %v546_v7 = vpop.eup %545  ;;  %393 = vst [vmem:[#allocation8 + $0x30] sm:$0xff] %v544_v6 }
 0x21f   :  { %v548_v8 = vpop.eup %547  ;;  %391 = vst [vmem:[#allocation8 + $0x20] sm:$0xff] %v546_v7 }
 0x220   :  { %v550_v9 = vpop.eup %549  ;;  %394 = vst [vmem:[#allocation8 + $0x38] sm:$0xff] %v548_v8 }
 0x221   :  { %392 = vst [vmem:[#allocation8 + $0x28] sm:$0xff] %v550_v9 }
 0x222   :  { %628 = shalt.err (!%p625_p0)
}
 0x223   :  { %s629_s10 = scalar_lea.hbm %s758_s5, 1024 }
 0x224   :  { %p630_p1 = scmp.ne.s32.totalorder %s758_s5, %s629_s10  ;;  %p633_p2 = scmp.lt.u32.totalorder %s629_s10, %s758_s5 }
 0x226   :  { %p635_p3 = pnand %p633_p2, %p630_p1 }
 0x228   :  { %638 = shalt.err (!%p635_p3)
}
 0x229   :  { %s651_s15 = smov 128   ;;  %s652_s16 = smov 8  }
 0x22a   :  { %406 = dma.vmem_to_hbm [thread:$0]  %s401_s6, 1024, %s758_s5, [#allocation4], %s651_s15, %s651_s15, %s652_s16  }
 0x22b   :  { %643 = dma.done.wait [#allocation4], 1024  }
 0x22c   :  { %644 = vsyncadd [#allocation4], 4294966272 }
 0x22d   :  { %410 = vsyncpa [#allocation3], 1 }
 0x22e   :  { %411 = vsyncpa [#allocation6], 1 }
 0x22f   :  { %412 = vsyncpa [#allocation4], 1 }

</bundles_post_ra>
